<compile_context>
chip_gen: v6e
topology: v6e:2x2x1
jax: 0.10.0
libtpu: 0.0.40
codegen_flags: <defaults>
</compile_context>

<pallas_src>
import jax
import jax.numpy as jnp
from jax.experimental import pallas as pl
from jax.experimental.pallas import tpu as pltpu


def _depth_to_space_kernel(x_ref, q_ref, o_ref):
    # x_ref: (m_blk, W*B) rows = flattened (n, c, h).
    # q_ref: (W*B, W*B) 0/1 column-permutation matrix.
    # o_ref: (m_blk, W*B) rows in (i0, w, i1) column order.
    x = x_ref[...].astype(q_ref.dtype)
    o_ref[...] = jnp.dot(
        x, q_ref[...], preferred_element_type=jnp.float32
    ).astype(o_ref.dtype)


def _column_permutation(W, b0, b1, dtype):
    """Q[j, k] = 1 iff input column j feeds output column k (k ordered as i0, w, i1)."""
    B = b0 * b1
    WB = W * B
    k = jnp.arange(WB)                      # k = i0*(W*b1) + w*b1 + i1
    i0 = k // (W * b1)
    rem = k - i0 * (W * b1)
    w = rem // b1
    i1 = rem - w * b1
    src = w * B + i0 * b1 + i1              # input column feeding output column k
    return (jnp.arange(WB)[:, None] == src[None, :]).astype(dtype)


def _pick_rows_per_block(m_total, lane_width, itemsize, target_bytes=2 << 20):
    """Largest multiple-of-8 divisor of m_total whose (rows, lane_width) tile stays under
    ~2 MiB (double-buffered in+out fits comfortably in v7x's scoped VMEM), while leaving
    >= 2 grid steps when possible so v7x megacore can shard across its 2 TensorCores."""
    max_rows = max(8, target_bytes // max(1, lane_width * itemsize))
    limit = min(m_total, max_rows)
    if m_total >= 16:
        limit = min(limit, m_total // 2)
    start = limit - (limit % 8)
    for d in range(start, 0, -8):
        if m_total % d == 0:
            return d
    return m_total  # fall back to a single full block (block dim == array dim is legal)


def depth_to_space(x, block_size):
    """x: (N, C, H, W, b0*b1) -> (N, C, H*b0, W*b1); matches the PyTorch DepthToSpace."""
    b0, b1 = block_size
    N, C, H, W, B = x.shape
    assert B == b0 * b1, "last dim must equal block_size[0]*block_size[1]"

    WB = W * B
    M = N * C * H

    # Contiguous (free) reshape: one row per (n, c, h), lane dim = W*B.
    x2 = x.reshape(M, WB)

    # 0/1 values are exact in bf16/f32; non-float inputs are routed through an exact f32
    # matmul (exact for |x| < 2^24).
    compute_dtype = jnp.bfloat16 if x.dtype == jnp.bfloat16 else jnp.float32
    q = _column_permutation(W, b0, b1, compute_dtype)

    m_blk = _pick_rows_per_block(M, WB, jnp.dtype(x.dtype).itemsize)
    grid = (M // m_blk,)

    nbytes = x2.size * jnp.dtype(x.dtype).itemsize
    cost = pl.CostEstimate(
        flops=0,  # bandwidth-bound data reorganization
        transcendentals=0,
        bytes_accessed=2 * nbytes + q.size * jnp.dtype(compute_dtype).itemsize,
    )

    z = pl.pallas_call(
        _depth_to_space_kernel,
        out_shape=jax.ShapeDtypeStruct((M, WB), x.dtype),
        grid=grid,
        in_specs=[
            pl.BlockSpec((m_blk, WB), lambda i: (i, 0)),
            pl.BlockSpec((WB, WB), lambda i: (0, 0)),
        ],
        out_specs=pl.BlockSpec((m_blk, WB), lambda i: (i, 0)),
        compiler_params=pltpu.CompilerParams(dimension_semantics=("parallel",)),
        cost_estimate=cost,
    )(x2, q)

    # Contiguous (free) reshape: rows are (n, c, h); columns are (i0, w, i1)
    # -> row-major identical to (N, C, H*b0, W*b1).
    return z.reshape(N, C, H * b0, W * b1)


def depth_to_space_reference(x, block_size):
    b0, b1 = block_size
    N, C, H, W, _ = x.shape
    y = x.reshape(N, C, H, W, b0, b1)
    y = jnp.transpose(y, (0, 1, 2, 4, 3, 5))
    return y.reshape(N, C, H * b0, W * b1)


if __name__ == "__main__":
    key = jax.random.PRNGKey(0)
    block_size = (2, 2)
    N, C, H, W = 2, 4, 16, 16
    x = jax.random.normal(key, (N, C, H, W, block_size[0] * block_size[1]), jnp.float32)

    out = jax.block_until_ready(depth_to_space(x, block_size))

    ref = depth_to_space_reference(x, block_size)
    assert out.shape == ref.shape == (N, C, H * block_size[0], W * block_size[1])
    assert jnp.allclose(out, ref, atol=0.0, rtol=0.0), "mismatch vs reference"

    print("KERNEL_OK")
</pallas_src>

<mosaic_0001>
module attributes {stable_mosaic.version = 11 : i64} {
  func.func @_depth_to_space_kernel(%arg0: i32, %arg1: memref<64x64xf32, #tpu.memory_space<vmem>>, %arg2: memref<64x64xf32, #tpu.memory_space<vmem>>, %arg3: memref<64x64xf32, #tpu.memory_space<vmem>>) attributes {dimension_semantics = [#tpu.dimension_semantics<parallel>], iteration_bounds = array<i64: 2>, scalar_prefetch = 0 : i64, scratch_operands = 0 : i64, tpu.core_type = #tpu.core_type<tc>, window_params = [{transform_indices = @transform_0, window_bounds = array<i64: 64, 64>}, {pipeline_mode = #tpu.pipeline_mode<synchronous>, transform_indices = @transform_1, window_bounds = array<i64: 64, 64>}, {transform_indices = @transform_2, window_bounds = array<i64: 64, 64>}]} {
    %c0 = arith.constant 0 : index
    %c0_0 = arith.constant 0 : index
    %0 = vector.load %arg1[%c0, %c0_0] : memref<64x64xf32, #tpu.memory_space<vmem>>, vector<64x64xf32>
    %c0_1 = arith.constant 0 : index
    %c0_2 = arith.constant 0 : index
    %1 = vector.load %arg2[%c0_1, %c0_2] : memref<64x64xf32, #tpu.memory_space<vmem>>, vector<64x64xf32>
    %cst = arith.constant dense<0.000000e+00> : vector<64x64xf32>
    %2 = tpu.matmul %0, %1, %cst {dimension_numbers = #tpu.dot_dimension_numbers<[1], [0], [0], [1], [0, 0, 1, 1], [], []>} : vector<64x64xf32>, vector<64x64xf32>, vector<64x64xf32> -> vector<64x64xf32>
    %c0_3 = arith.constant 0 : index
    %c0_4 = arith.constant 0 : index
    %3 = vector.load %arg3[%c0_3, %c0_4] : memref<64x64xf32, #tpu.memory_space<vmem>>, vector<64x64xf32>
    tpu.vector_store %arg3[%c0_3, %c0_4], %2 {strides = array<i32>} : memref<64x64xf32, #tpu.memory_space<vmem>>, vector<64x64xf32>,
    return
  }
  func.func @transform_0(%arg0: i32) -> (i32, i32) {
    %c0_i32 = arith.constant 0 : i32
    %c0_i32_0 = arith.constant 0 : i32
    return %arg0, %c0_i32 : i32, i32
  }
  func.func @transform_1(%arg0: i32) -> (i32, i32) {
    %c0_i32 = arith.constant 0 : i32
    %c0_i32_0 = arith.constant 0 : i32
    %c0_i32_1 = arith.constant 0 : i32
    return %c0_i32, %c0_i32_0 : i32, i32
  }
  func.func @transform_2(%arg0: i32) -> (i32, i32) {
    %c0_i32 = arith.constant 0 : i32
    %c0_i32_0 = arith.constant 0 : i32
    return %arg0, %c0_i32 : i32, i32
  }
}

</mosaic_0001>

<bundles_post_ra>
// kernel: tpu_custom_call.1
= control target key start
LH: loop header
LB: loop body
LE: loop exit
PB: predicated region body
PF: predicated region fallthrough
CT: control target
= control target key end

     0   :  { %s467_s9 = smov 0   ;;  %s531_s0 = inlined_call_operand.vmem [shape: f32[128,64], index: 0, kind: input, shape index: {}]   ;;  %s532_s1 = inlined_call_operand.vmem [shape: f32[64,64], index: 1, kind: input, shape index: {}]   ;;  %s533_s2 = inlined_call_operand.vmem [shape: f32[128,64], index: 2, kind: output, shape index: {}]  }
   0x1 LB: > { %s357_s10 = sadd.s32 4294967295, %s450_s9   ;;  %p361_p0 = scmp.ge.s32.totalorder %s450_s9, 1  ;;  %s450_s9 = sphi %s467_s9, %s12_s9  }
   0x2   : > { %p113_p1 = scmp.lt.s32.totalorder %s450_s9, 3 }
   0x4   : > { %p114_p2 = pnand %p361_p0, %p113_p1 }
   0x5   : > { %s362_s15 = sshll.u32 (!%p114_p2), %s357_s10, 3 }
   0x6   : > { %117 = sbr.rel (%p114_p2) target bundleno = 229 (0xe5), region = 28  ;;  %p136_p3 = scmp.lt.s32.totalorder (!%p114_p2), %s362_s15, 15 }
   0xb   : > { %v162_v0 = vld [vmem:[%s532_s1 + $0x38] sm:$0xff]  ;;  %v161_v1 = vld [vmem:[%s532_s1 + $0x30] sm:$0xff]  ;;  %v160_v2 = vld [vmem:[%s532_s1 + $0x28] sm:$0xff]  ;;  %s535_s15 = smov (!%p136_p3, %s362_s15), 15  ;;  %vm163_vm0 = vcmask 523264  }
   0xc   : > { %392 = vmatprep.subr.mxu0 %v162_v0  ;;  %420 = vmatprep.subr.mxu1 %v162_v0  ;;  %v159_v3 = vld [vmem:[%s532_s1 + $0x20] sm:$0xff]  ;;  %v158_v4 = vld [vmem:[%s532_s1 + $0x18] sm:$0xff]  ;;  %v157_v5 = vld [vmem:[%s532_s1 + $0x10] sm:$0xff]  ;;  %s363_s24 = sshll.u32 %s535_s15, 3 }
   0xd   : > { %393 = vmatpush3.msra.mxu0 %v162_v0  ;;  %428 = vmatpush3.msra.mxu1 %v162_v0  ;;  %v156_v6 = vld [vmem:[%s532_s1 + $0x8] sm:$0xff]  ;;  %s139_s29 = scalar_lea.vmem %s531_s0, %s363_s24  ;;  %v155_v7 = vld [vmem:[%s532_s1] sm:$0xff]  ;;  %s145_s6 = scalar_lea.vmem %s533_s2, %s363_s24 }
   0xe   : > { %394 = vmatprep.subr.mxu0 %v161_v1  ;;  %421 = vmatprep.subr.mxu1 %v161_v1  ;;  %v147_v8 = vld [vmem:[%s139_s29] sm:$0xff]  ;;  %v148_v10 = vld [vmem:[%s139_s29 + $0x8] sm:$0xff]  ;;  %v149_v12 = vld [vmem:[%s139_s29 + $0x10] sm:$0xff] }
   0xf   : > { %395 = vmatpush3.msra.mxu0 %v161_v1  ;;  %429 = vmatpush3.msra.mxu1 %v161_v1  ;;  %v151_v9 = vld [vmem:[%s139_s29 + $0x20] sm:$0xff]  ;;  %v152_v11 = vld [vmem:[%s139_s29 + $0x28] sm:$0xff]  ;;  %v153_v13 = vld [vmem:[%s139_s29 + $0x30] sm:$0xff] }
  0x10   : > { %396 = vmatprep.subr.mxu0 %v160_v2  ;;  %422 = vmatprep.subr.mxu1 %v160_v2  ;;  %v150_v14 = vld [vmem:[%s139_s29 + $0x18] sm:$0xff] }
  0x11   : > { %397 = vmatpush3.msra.mxu0 %v160_v2  ;;  %430 = vmatpush3.msra.mxu1 %v160_v2  ;;  %v154_v15 = vld [vmem:[%s139_s29 + $0x38] sm:$0xff] }
  0x12   : > { %398 = vmatprep.subr.mxu0 %v159_v3  ;;  %423 = vmatprep.subr.mxu1 %v159_v3 }
  0x13   : > { %399 = vmatpush3.msra.mxu0 %v159_v3  ;;  %431 = vmatpush3.msra.mxu1 %v159_v3 }
  0x14   : > { %400 = vmatprep.subr.mxu0 %v158_v4  ;;  %424 = vmatprep.subr.mxu1 %v158_v4 }
  0x15   : > { %401 = vmatpush3.msra.mxu0 %v158_v4  ;;  %432 = vmatpush3.msra.mxu1 %v158_v4 }
  0x16   : > { %402 = vmatprep.subr.mxu0 %v157_v5  ;;  %425 = vmatprep.subr.mxu1 %v157_v5 }
  0x17   : > { %403 = vmatpush3.msra.mxu0 %v157_v5  ;;  %433 = vmatpush3.msra.mxu1 %v157_v5 }
  0x18   : > { %404 = vmatprep.subr.mxu0 %v156_v6  ;;  %426 = vmatprep.subr.mxu1 %v156_v6 }
  0x19   : > { %405 = vmatpush3.msra.mxu0 %v156_v6  ;;  %434 = vmatpush3.msra.mxu1 %v156_v6 }
  0x1a   : > { %406 = vmatprep.subr.mxu0 %v155_v7  ;;  %427 = vmatprep.subr.mxu1 %v155_v7 }
  0x1b   : > { %407 = vmatpush3.msra.mxu0 %v155_v7  ;;  %435 = vmatpush3.msra.mxu1 %v155_v7 }
  0x1c   : > { %408 = vmatprep.mubr.msk.f32.mxu0 %vm163_vm0, %v147_v8  ;;  %414 = vmatprep.mubr.msk.f32.mxu1 %vm163_vm0, %v151_v9 }
  0x1d   : > { %409 = vmatmul.mubr.msk.f32.vlgmr.msra.gmra.mxu0 %vm163_vm0, %v148_v10  ;;  %415 = vmatmul.mubr.msk.f32.vlgmr.msra.gmra.mxu1 %vm163_vm0, %v152_v11 }
  0x1e   : > { %411 = vmatprep.mubr.msk.f32.mxu0 %vm163_vm0, %v149_v12  ;;  %417 = vmatprep.mubr.msk.f32.mxu1 %vm163_vm0, %v153_v13 }
  0x21   : > { %412 = vmatmul.mubr.msk.f32.gmra.mxu0 %vm163_vm0, %v150_v14  ;;  %418 = vmatmul.mubr.msk.f32.gmra.mxu1 %vm163_vm0, %v154_v15 }
  0xdd   : > { %v410_v16 = vpop.f32.mrf.mxu0  ;;  %v416_v17 = vpop.f32.mrf.mxu1 }
  0xde   : > { %294 = vst.msk [vmem:[%s145_s6 + $0x8] sm:$0xff] %vm163_vm0, %v410_v16  ;;  %298 = vst.msk [vmem:[%s145_s6 + $0x28] sm:$0xff] %vm163_vm0, %v416_v17 }
  0xdf   : > { %v254_v18 = vpop.f32.mrf.mxu0  ;;  %v274_v19 = vpop.f32.mrf.mxu1 }
  0xe0   : > { %293 = vst.msk [vmem:[%s145_s6] sm:$0xff] %vm163_vm0, %v254_v18  ;;  %297 = vst.msk [vmem:[%s145_s6 + $0x20] sm:$0xff] %vm163_vm0, %v274_v19 }
  0xe1   : > { %v413_v20 = vpop.f32.mrf.mxu0  ;;  %v419_v21 = vpop.f32.mrf.mxu1 }
  0xe2   : > { %296 = vst.msk [vmem:[%s145_s6 + $0x18] sm:$0xff] %vm163_vm0, %v413_v20  ;;  %300 = vst.msk [vmem:[%s145_s6 + $0x38] sm:$0xff] %vm163_vm0, %v419_v21 }
  0xe3   : > { %v264_v22 = vpop.f32.mrf.mxu0  ;;  %v284_v23 = vpop.f32.mrf.mxu1 }
  0xe4   : > { %295 = vst.msk [vmem:[%s145_s6 + $0x10] sm:$0xff] %vm163_vm0, %v264_v22  ;;  %299 = vst.msk [vmem:[%s145_s6 + $0x30] sm:$0xff] %vm163_vm0, %v284_v23 }
  0xe5 PF: > { %s12_s9 = sadd.s32 1, %s450_s9  }
  0xe6   : > { %p9_p4 = scmp.ge.s32.totalorder %s12_s9, 4  }
  0xe8   :  { %11 = sbr.rel (!%p9_p4) target bundleno = 1 (0x1), region = 58 }

</bundles_post_ra>
